<compile_context>
chip_gen: v5e
topology: v5e:2x2
jax: 0.10.0
libtpu: 0.0.40
codegen_flags: <defaults>
</compile_context>

<pallas_src>
import functools
import math

import numpy as np
import jax
import jax.numpy as jnp
from jax import lax
from jax.experimental import pallas as pl
from jax.experimental.pallas import tpu as pltpu


# ----------------------------------------------------------------------------
# VMEM budget / row-tile derivation
# ----------------------------------------------------------------------------

MIN_TILE_M = 512      # below this the ~0.35us per-grid-step overhead dominates
MAX_TILE_M = 8192
LANE = 128


def _vmem_budget_bytes() -> int:
    """~3/4 of physical VMEM, capped at 96 MiB (=> 48 MiB on v7x, 96 MiB on
    v5e/v6e).  Conservative 64 MiB fallback if the query is unavailable."""
    phys = 64 * 1024 * 1024
    try:
        info = pltpu.get_tpu_info()
        v = getattr(info, "vmem_capacity_bytes", None)
        if v:
            phys = int(v)
    except Exception:
        pass
    return int(min((phys * 3) // 4, 96 * 1024 * 1024))


def _row_tile(rows: int, hid: int, n_pad: int, in_bytes: int, budget: int) -> int:
    """Rows per grid step, derived from the VMEM budget."""
    # Per-row streamed footprint: 2x double-buffered X tile + 2x double-
    # buffered combined f32 output tile + headroom for the in-kernel f32
    # intermediate y.
    per_row = 2 * hid * in_bytes + 2 * n_pad * 4 + n_pad * 4
    resident = 2 * (hid * n_pad * in_bytes + n_pad * 4)          # W_cat + b_cat
    avail = max(budget - resident, per_row * 8)
    tm = max(MIN_TILE_M, min(avail // per_row, MAX_TILE_M))
    # Keep >= 2 grid steps when the input is big enough to split so the
    # "parallel" row axis can shard across v7x's two TensorCores.
    if rows > MIN_TILE_M:
        half = -(-rows // 2)               # ceil(rows / 2)
        half = -(-half // 8) * 8           # round up to multiple of 8
        tm = min(tm, half)
    tm = max((tm // 8) * 8, 8)             # sublane-aligned block rows
    if tm >= rows:
        return rows                        # single whole-array block
    return tm


def _pad_cols(w, b):
    """Zero-pad [hid, n] weight / [1, n] bias to the next multiple of 128
    output columns so every output store is a full-lane unmasked vst."""
    n = w.shape[1]
    n_pad = -(-n // LANE) * LANE
    if n_pad != n:
        w = jnp.pad(w, ((0, 0), (0, n_pad - n)))
        b = jnp.pad(b, ((0, 0), (0, n_pad - n)))
    return w, b


# ----------------------------------------------------------------------------
# Pallas kernels (single MXU matmul + fused grouped softmax epilogue)
# ----------------------------------------------------------------------------

def _linear_kernel(x_ref, w_ref, b_ref, o_ref):
    o_ref[...] = (jnp.dot(x_ref[...], w_ref[...],
                          preferred_element_type=jnp.float32) + b_ref[...])


def _group_stats(y, col, col0, m, K):
    """Per-row max / exp / exp-sum over each K-wide group of the m groups
    starting at column `col0`, broadcast back onto y's full lane width.
    Columns outside the groups get mx=0, e=exp(0)=1, s=1 (harmless)."""
    in_group = (col >= col0) & (col < col0 + m * K)
    mx = jnp.zeros_like(y)
    for g in range(m):
        mask = (col >= col0 + g * K) & (col < col0 + (g + 1) * K)
        mg = jnp.max(jnp.where(mask, y, -jnp.inf), axis=1, keepdims=True)
        mx = jnp.where(mask, mg, mx)
    e = jnp.exp(jnp.where(in_group, y - mx, 0.0))
    s = jnp.ones_like(y)
    for g in range(m):
        mask = (col >= col0 + g * K) & (col < col0 + (g + 1) * K)
        sg = jnp.sum(jnp.where(mask, e, 0.0), axis=1, keepdims=True)
        s = jnp.where(mask, sg, s)
    # TODO(synk): for large m, replace the O(m) masked passes with a
    # log2(K)-step pltpu.roll segmented reduction on the (idle) XLU slot.
    return mx, e, s, in_group


def _mdn_softmax_kernel(m, K, x_ref, w_ref, b_ref, o_ref):
    # y = [mean | var | pi | zero-pad]; softmax over each K-wide pi group is
    # fused before the single lane-dense store; heads split in the wrapper.
    N = m * K
    y = (jnp.dot(x_ref[...], w_ref[...],
                 preferred_element_type=jnp.float32) + b_ref[...])
    col = lax.broadcasted_iota(jnp.int32, y.shape, 1)
    _, e, s, in_pi = _group_stats(y, col, 2 * N, m, K)
    r = pl.reciprocal(s, approx=True)
    r = r * (2.0 - s * r)                 # one Newton step -> ~1e-6 rel error
    o_ref[...] = jnp.where(in_pi, e * r, y)


def _log_softmax_kernel(m, K, x_ref, w_ref, b_ref, o_ref):
    y = (jnp.dot(x_ref[...], w_ref[...],
                 preferred_element_type=jnp.float32) + b_ref[...])
    col = lax.broadcasted_iota(jnp.int32, y.shape, 1)
    mx, _, s, in_grp = _group_stats(y, col, 0, m, K)
    o_ref[...] = jnp.where(in_grp, (y - mx) - jnp.log(s), y)


# ----------------------------------------------------------------------------
# pallas_call wrapper (row-tiled, pipelined, parallel row axis)
# ----------------------------------------------------------------------------

def _pallas_linear_heads(kernel_fn, x, w_pad, b_pad, *, use_bf16,
                         transcendentals_per_row=0):
    rows, hid = x.shape
    n_pad = w_pad.shape[1]
    in_dtype = jnp.bfloat16 if use_bf16 else jnp.float32
    in_bytes = jnp.dtype(in_dtype).itemsize
    budget = _vmem_budget_bytes()
    tm = _row_tile(rows, hid, n_pad, in_bytes, budget)

    xk = x.astype(in_dtype)
    wk = w_pad.astype(in_dtype)          # bias stays f32 (added post-matmul)

    return pl.pallas_call(
        kernel_fn,
        grid=(pl.cdiv(rows, tm),),
        in_specs=[
            pl.BlockSpec((tm, hid), lambda i: (i, 0)),        # streamed X
            pl.BlockSpec((hid, n_pad), lambda i: (0, 0)),     # VMEM-resident W
            pl.BlockSpec((1, n_pad), lambda i: (0, 0)),       # VMEM-resident b
        ],
        out_specs=pl.BlockSpec((tm, n_pad), lambda i: (i, 0)),
        out_shape=jax.ShapeDtypeStruct((rows, n_pad), jnp.float32),
        compiler_params=pltpu.CompilerParams(
            dimension_semantics=("parallel",),   # megacore sharding on v7x
            vmem_limit_bytes=budget),
        cost_estimate=pl.CostEstimate(
            flops=2 * rows * hid * n_pad,
            bytes_accessed=(rows * hid * in_bytes + hid * n_pad * in_bytes
                            + n_pad * 4 + rows * n_pad * 4),
            transcendentals=transcendentals_per_row * rows),
    )(xk, wk, b_pad)


# ----------------------------------------------------------------------------
# Parameter init (deterministic, PyTorch nn.Linear-style uniform(-1/sqrt(hid)))
# ----------------------------------------------------------------------------

def _init_linear(key, hid, out):
    kw, kb = jax.random.split(key)
    lim = 1.0 / math.sqrt(hid)
    w = jax.random.uniform(kw, (hid, out), jnp.float32, -lim, lim)   # [hid,out]
    b = jax.random.uniform(kb, (1, out), jnp.float32, -lim, lim)     # [1, out]
    return w, b


# ----------------------------------------------------------------------------
# Regressor (JAX / Pallas port of the PyTorch module)
# ----------------------------------------------------------------------------

class Regressor:
    def __init__(self, Loss, hid, m, key, use_bf16=True):
        self.loss_function = Loss
        self.m = m
        self.hid = hid
        self.use_bf16 = use_bf16
        k0, k1, k2, k3 = jax.random.split(key, 4)

        if Loss == 'uni-Gaussian-novar':
            self.mean_w, self.mean_b = _init_linear(k0, hid, m)
            # torch.rand(1) * -1 -> scalar in [-1, 0]
            self.var_param = jax.random.uniform(k1, (1,), jnp.float32) * -1.0
            self.w_pad, self.b_pad = _pad_cols(self.mean_w, self.mean_b)
        if Loss == 'Gaussian':
            self.mean_w, self.mean_b = _init_linear(k0, hid, m)
            self.var_w, self.var_b = _init_linear(k1, hid, m)
            self.w_pad, self.b_pad = _pad_cols(
                jnp.concatenate([self.mean_w, self.var_w], axis=1),
                jnp.concatenate([self.mean_b, self.var_b], axis=1))
        if Loss[:12] == 'mul-Gaussian':
            self.K = int(Loss.split('@')[-1])
            self.mean_w, self.mean_b = _init_linear(k0, hid, m * self.K)
            self.var_w, self.var_b = _init_linear(k1, hid, m * self.K)
            self.pi_w, self.pi_b = _init_linear(k2, hid, m * self.K)
            self.w_pad, self.b_pad = _pad_cols(
                jnp.concatenate([self.mean_w, self.var_w, self.pi_w], axis=1),
                jnp.concatenate([self.mean_b, self.var_b, self.pi_b], axis=1))
        if Loss[:7] == 'softmax':
            self.K = int(Loss.split('@')[-1])
            self.sm_w, self.sm_b = _init_linear(k3, hid, m * self.K)
            self.w_pad, self.b_pad = _pad_cols(self.sm_w, self.sm_b)

    def forward(self, X):
        m = self.m
        if self.loss_function == 'uni-Gaussian-novar':
            batch_size = X.shape[0]
            y = _pallas_linear_heads(_linear_kernel, X, self.w_pad, self.b_pad,
                                     use_bf16=self.use_bf16)
            mean = y[:, :m]                               # head slice (glue)
            # trivial scalar expand (matches .view(1,1).expand) -> JAX glue
            var = jnp.broadcast_to(self.var_param.reshape(1, 1),
                                   (batch_size, m))
            return [mean, var]

        if self.loss_function == 'Gaussian':
            y = _pallas_linear_heads(_linear_kernel, X, self.w_pad, self.b_pad,
                                     use_bf16=self.use_bf16)
            return [y[:, :m], y[:, m:2 * m]]

        if self.loss_function[:12] == 'mul-Gaussian':
            seqlen, batch_size, _ = X.shape
            K = self.K
            N = m * K
            x2d = X.reshape(seqlen * batch_size, self.hid)       # glue reshape
            y = _pallas_linear_heads(
                functools.partial(_mdn_softmax_kernel, m, K),
                x2d, self.w_pad, self.b_pad, use_bf16=self.use_bf16,
                transcendentals_per_row=N + m)
            mean = y[:, 0 * N:1 * N].reshape(seqlen, batch_size, m, K)
            var = y[:, 1 * N:2 * N].reshape(seqlen, batch_size, m, K)
            pi = y[:, 2 * N:3 * N].reshape(seqlen, batch_size, m, K)  # fused softmax
            return [mean, var, pi]

        if self.loss_function[:7] == 'softmax':
            seqlen, batch_size, _ = X.shape
            K = self.K
            N = m * K
            x2d = X.reshape(seqlen * batch_size, self.hid)
            y = _pallas_linear_heads(
                functools.partial(_log_softmax_kernel, m, K),
                x2d, self.w_pad, self.b_pad, use_bf16=self.use_bf16,
                transcendentals_per_row=N + m)
            pred = y[:, :N].reshape(seqlen, batch_size, m, K)    # fused log_softmax
            return [pred]

        print('no loss found')


# ----------------------------------------------------------------------------
# Self-test
# ----------------------------------------------------------------------------

if __name__ == "__main__":
    key = jax.random.PRNGKey(0)
    k_param, k_x2, k_x3, k_xl = jax.random.split(key, 4)

    hid, m, K, seqlen, batch = 32, 4, 4, 8, 2
    X2 = jax.random.normal(k_x2, (batch, hid), jnp.float32)           # 2-D branches
    X3 = jax.random.normal(k_x3, (seqlen, batch, hid), jnp.float32)   # 3-D branches

    def rnd(a):
        # reference operands rounded the same way the kernel rounds them (bf16)
        return a.astype(jnp.bfloat16).astype(jnp.float32)

    # --- uni-Gaussian-novar (bf16 inputs) -----------------------------------
    reg = Regressor('uni-Gaussian-novar', hid, m, k_param)
    mean, var = [jax.block_until_ready(o) for o in reg.forward(X2)]
    ref_mean = rnd(X2) @ rnd(reg.mean_w) + reg.mean_b
    assert np.allclose(np.asarray(mean), np.asarray(ref_mean), atol=1e-4)
    assert var.shape == (batch, m)

    # --- Gaussian (bf16 inputs) ----------------------------------------------
    reg = Regressor('Gaussian', hid, m, k_param)
    mean, var = [jax.block_until_ready(o) for o in reg.forward(X2)]
    assert np.allclose(np.asarray(mean),
                       np.asarray(rnd(X2) @ rnd(reg.mean_w) + reg.mean_b), atol=1e-4)
    assert np.allclose(np.asarray(var),
                       np.asarray(rnd(X2) @ rnd(reg.var_w) + reg.var_b), atol=1e-4)

    # --- Gaussian, f32 path, multi-step grid + partial last row tile ---------
    XL = jax.random.normal(k_xl, (1030, hid), jnp.float32)
    reg32 = Regressor('Gaussian', hid, m, k_param, use_bf16=False)
    mean, var = [jax.block_until_ready(o) for o in reg32.forward(XL)]
    assert np.allclose(np.asarray(mean),
                       np.asarray(XL @ reg32.mean_w + reg32.mean_b), atol=1e-4)
    assert np.allclose(np.asarray(var),
                       np.asarray(XL @ reg32.var_w + reg32.var_b), atol=1e-4)

    # --- mul-Gaussian@K (bf16 inputs, fused pi softmax) -----------------------
    reg = Regressor(f'mul-Gaussian@{K}', hid, m, k_param)
    mean, var, pi = [jax.block_until_ready(o) for o in reg.forward(X3)]
    x2d = X3.reshape(seqlen * batch, hid)
    x2r = rnd(x2d)
    ref_mean = (x2r @ rnd(reg.mean_w) + reg.mean_b).reshape(seqlen, batch, m, K)
    ref_var = (x2r @ rnd(reg.var_w) + reg.var_b).reshape(seqlen, batch, m, K)
    ref_pi = jax.nn.softmax(
        (x2r @ rnd(reg.pi_w) + reg.pi_b).reshape(seqlen * batch * m, K), axis=-1
    ).reshape(seqlen, batch, m, K)
    assert np.allclose(np.asarray(mean), np.asarray(ref_mean), atol=1e-4)
    assert np.allclose(np.asarray(var), np.asarray(ref_var), atol=1e-4)
    assert np.allclose(np.asarray(pi), np.asarray(ref_pi), atol=1e-4)

    # --- softmax@K (bf16 inputs, fused log_softmax) ---------------------------
    reg = Regressor(f'softmax@{K}', hid, m, k_param)
    (pred,) = [jax.block_until_ready(o) for o in reg.forward(X3)]
    ref_pred = jax.nn.log_softmax(
        (x2r @ rnd(reg.sm_w) + reg.sm_b).reshape(seqlen * batch * m, K), axis=-1
    ).reshape(seqlen, batch, m, K)
    assert np.allclose(np.asarray(pred), np.asarray(ref_pred), atol=1e-4)

    print("KERNEL_OK")
</pallas_src>

<mosaic_0001>
module attributes {stable_mosaic.version = 11 : i64} {
  func.func @_linear_kernel(%arg0: i32, %arg1: memref<2x32xbf16, #tpu.memory_space<vmem>>, %arg2: memref<32x128xbf16, #tpu.memory_space<vmem>>, %arg3: memref<1x128xf32, #tpu.memory_space<vmem>>, %arg4: memref<2x128xf32, #tpu.memory_space<vmem>>) attributes {dimension_semantics = [#tpu.dimension_semantics<parallel>], iteration_bounds = array<i64: 1>, scalar_prefetch = 0 : i64, scratch_operands = 0 : i64, tpu.core_type = #tpu.core_type<tc>, window_params = [{transform_indices = @transform_0, window_bounds = array<i64: 2, 32>}, {pipeline_mode = #tpu.pipeline_mode<synchronous>, transform_indices = @transform_1, window_bounds = array<i64: 32, 128>}, {pipeline_mode = #tpu.pipeline_mode<synchronous>, transform_indices = @transform_2, window_bounds = array<i64: 1, 128>}, {transform_indices = @transform_3, window_bounds = array<i64: 2, 128>}]} {
    %c0 = arith.constant 0 : index
    %c0_0 = arith.constant 0 : index
    %0 = vector.load %arg1[%c0, %c0_0] : memref<2x32xbf16, #tpu.memory_space<vmem>>, vector<2x32xbf16>
    %c0_1 = arith.constant 0 : index
    %c0_2 = arith.constant 0 : index
    %1 = vector.load %arg2[%c0_1, %c0_2] : memref<32x128xbf16, #tpu.memory_space<vmem>>, vector<32x128xbf16>
    %cst = arith.constant dense<0.000000e+00> : vector<2x128xf32>
    %2 = tpu.matmul %0, %1, %cst {dimension_numbers = #tpu.dot_dimension_numbers<[1], [0], [0], [1], [0, 0, 1, 1], [], []>} : vector<2x32xbf16>, vector<32x128xbf16>, vector<2x128xf32> -> vector<2x128xf32>
    %c0_3 = arith.constant 0 : index
    %c0_4 = arith.constant 0 : index
    %3 = vector.load %arg3[%c0_3, %c0_4] : memref<1x128xf32, #tpu.memory_space<vmem>>, vector<1x128xf32>
    %4 = vector.broadcast %3 : vector<1x128xf32> to vector<2x128xf32>
    %5 = arith.addf %2, %4 : vector<2x128xf32>
    %c0_5 = arith.constant 0 : index
    %c0_6 = arith.constant 0 : index
    %6 = vector.load %arg4[%c0_5, %c0_6] : memref<2x128xf32, #tpu.memory_space<vmem>>, vector<2x128xf32>
    tpu.vector_store %arg4[%c0_5, %c0_6], %5 {strides = array<i32>} : memref<2x128xf32, #tpu.memory_space<vmem>>, vector<2x128xf32>,
    return
  }
  func.func @transform_0(%arg0: i32) -> (i32, i32) {
    %c0_i32 = arith.constant 0 : i32
    %c0_i32_0 = arith.constant 0 : i32
    return %arg0, %c0_i32 : i32, i32
  }
  func.func @transform_1(%arg0: i32) -> (i32, i32) {
    %c0_i32 = arith.constant 0 : i32
    %c0_i32_0 = arith.constant 0 : i32
    %c0_i32_1 = arith.constant 0 : i32
    return %c0_i32, %c0_i32_0 : i32, i32
  }
  func.func @transform_2(%arg0: i32) -> (i32, i32) {
    %c0_i32 = arith.constant 0 : i32
    %c0_i32_0 = arith.constant 0 : i32
    %c0_i32_1 = arith.constant 0 : i32
    return %c0_i32, %c0_i32_0 : i32, i32
  }
  func.func @transform_3(%arg0: i32) -> (i32, i32) {
    %c0_i32 = arith.constant 0 : i32
    %c0_i32_0 = arith.constant 0 : i32
    return %arg0, %c0_i32 : i32, i32
  }
}

</mosaic_0001>

<bundles_post_ra>
// kernel: tpu_custom_call.1
= control target key start
LH: loop header
LB: loop body
LE: loop exit
PB: predicated region body
PF: predicated region fallthrough
CT: control target
= control target key end

     0   :  { %8 = vsyncpa [#allocation3], 0  ;;  %s235_s0 = inlined_call_operand.hbm [shape: bf16[2,32], index: 0, kind: input, shape index: {}]   ;;  %s236_s1 = inlined_call_operand.hbm [shape: bf16[32,128], index: 1, kind: input, shape index: {}]   ;;  %s237_s2 = inlined_call_operand.vmem [shape: f32[1,128], index: 2, kind: input, shape index: {}]   ;;  %s238_s3 = inlined_call_operand.hbm [shape: f32[2,128], index: 3, kind: output, shape index: {}]  }
   0x1   :  { %9 = vsyncpa [#allocation6], 0 }
   0x2   :  { %10 = vsyncpa [#allocation4], 0  ;;  %s16_s14 = sshll.u32 %s235_s0, 4  ;;  %s198_s15 = smov [#allocation2]   ;;  %s17_s14 = int_to_ptr.hbm [resolvable:$true] %s16_s14 }
   0x3   :  { %s18_s16 = sshll.u32 %s198_s15, 4  ;;  %s26_s19 = sshll.u32 %s236_s1, 4  ;;  %s19_s16 = int_to_ptr.vmem [resolvable:$true] %s18_s16  ;;  %s27_s19 = int_to_ptr.hbm [resolvable:$true] %s26_s19 }
   0x4   :  { %21 = dma.hbm_to_vmem [thread:$0]  %s17_s14, 16, %s19_s16, [#allocation3]  }
   0x5   :  { %s199_s20 = smov [#allocation5]   ;;  %s200_s22 = smov 64  }
   0x6   :  { %s28_s21 = sshll.u32 %s199_s20, 4  ;;  %s201_s23 = smov 4   ;;  %s29_s21 = int_to_ptr.vmem [resolvable:$true] %s28_s21 }
   0x7   :  { %34 = dma.hbm_to_vmem [thread:$0]  %s27_s19, 256, %s29_s21, [#allocation6], %s200_s22, %s200_s22, %s201_s23  }
   0x8   :  { %192 = dma.done.wait [#allocation3], 16  }
   0x9   :  { %193 = vsyncadd [#allocation3], 4294967280 }
   0xa   :  { %194 = dma.done.wait [#allocation6], 256  }
   0xb   :  { %195 = vsyncadd [#allocation6], 4294967040  ;;  %v113_v0 = vld [vmem:[#allocation5 + $0x8] sm:$0xff]  ;;  %v112_v1 = vld [vmem:[#allocation5] sm:$0xff]  ;;  %vm67_vm0 = vcmask 261120   ;;  %s202_s24 = smov [#allocation7]  }
   0xc   :  { %77 = vmatpush.bf16.msra.mxu0 %v113_v0  ;;  %v46_v2 = vld [vmem:[#allocation2] sm:$0x1]  ;;  %s90_s25 = sshll.u32 %s202_s24, 4  ;;  %s92_s28 = sshll.u32 %s238_s3, 4  ;;  %s91_s25 = int_to_ptr.vmem [resolvable:$true] %s90_s25  ;;  %s93_s28 = int_to_ptr.hbm [resolvable:$true] %s92_s28 }
   0xd   :  { %v119_v3 = vld [vmem:[%s237_s2] ss:$0 sm:$0xff] }
  0x10   :  { %78 = vmatpush.bf16.msra.mxu0 %v112_v1 }
  0x13   :  { %111 = vmatmul.msk.bf16.vlgmr.msra.gmra.mxu0 %vm67_vm0, %v46_v2 }
  0x90   :  { %v80_v4 = vpop.f32.mrf.mxu0 }
  0x91   :  { %v81_v5 = vadd.f32 %v119_v3, %v80_v4 }
  0x93   :  { %84 = vst [vmem:[#allocation7] sm:$0x3] %v81_v5 }
  0x94   :  { %95 = dma.vmem_to_hbm [thread:$0]  %s91_s25, 32, %s93_s28, [#allocation4]  }
  0x98   :  { %v82_v6 = vpop.f32.mrf.mxu0 }
  0x99   :  { %196 = dma.done.wait [#allocation4], 32  }
  0x9a   :  { %197 = vsyncadd [#allocation4], 4294967264 }
  0x9b   :  { %100 = vsyncpa [#allocation3], 1 }
  0x9c   :  { %101 = vsyncpa [#allocation6], 1 }
  0x9d   :  { %102 = vsyncpa [#allocation4], 1 }

</bundles_post_ra>
